<compile_context>
chip_gen: v6e
topology: v6e:2x2x1
jax: 0.10.0
libtpu: 0.0.40
codegen_flags: <defaults>
</compile_context>

<pallas_src>
import jax
import jax.numpy as jnp
from jax.experimental import pallas as pl
from jax.experimental.pallas import tpu as pltpu


def _round_up(x, m):
    return ((x + m - 1) // m) * m


def restorer_kernel(e_ref, w_ref, b_ref, out_ref, max_sc, idx_sc):
    # e_ref: (D, tm)  emb^T tile        (constant over vocab axis)
    # w_ref: (tv, D)  weight tile       (torch layout, streamed over vocab)
    # b_ref: (tv, 1)  bias tile
    # out_ref: (1, tm) int32            (lane-dense indices)
    # max_sc/idx_sc: (1, tm) running max / argmax across vocab tiles
    j = pl.program_id(1)
    tv = w_ref.shape[0]

    @pl.when(j == 0)
    def _():
        max_sc[...] = jnp.full(max_sc.shape, -jnp.inf, dtype=max_sc.dtype)
        idx_sc[...] = jnp.zeros(idx_sc.shape, dtype=idx_sc.dtype)

    # logits chunk: (tv, tm). log_softmax omitted (argmax-invariant).
    x = jnp.dot(w_ref[...], e_ref[...], preferred_element_type=jnp.float32)
    x = x + b_ref[...]  # (tv, 1) broadcast over lanes

    # chunk max + first-occurrence argmax (reduce over sublanes -> lane-dense)
    chunk_max = jnp.max(x, axis=0, keepdims=True)                      # (1, tm)
    ids = jax.lax.broadcasted_iota(jnp.int32, x.shape, 0) + j * tv
    sentinel = jnp.int32(2 ** 30)
    masked = jnp.where(x == chunk_max, ids, sentinel)
    chunk_idx = jnp.min(masked, axis=0, keepdims=True)                 # (1, tm)

    # running update; strictly-greater keeps earliest chunk on ties
    better = chunk_max > max_sc[...]
    max_sc[...] = jnp.where(better, chunk_max, max_sc[...])
    idx_sc[...] = jnp.where(better, chunk_idx, idx_sc[...])

    @pl.when(j == pl.num_programs(1) - 1)
    def _():
        out_ref[...] = idx_sc[...]


def restorer_forward(emb, weight, bias, *, tm=256, tv=512):
    """emb: (B, S, D) f32; weight: (V, D) f32 (torch nn.Linear layout);
    bias: (V,) f32  ->  (B, S) int32 argmax indices (== Restorer.forward)."""
    B, S, D = emb.shape
    V = weight.shape[0]
    M = B * S

    # lane-dense tiles: multiples of 128, capped to the padded problem size
    tm = min(_round_up(tm, 128), _round_up(M, 128))
    tv = min(_round_up(tv, 128), _round_up(V, 128))
    M_pad = _round_up(M, tm)
    V_pad = _round_up(V, tv)

    # emb^T: (D, M_pad); padded rows are zeros (results sliced off below)
    emb_t = jnp.transpose(emb.reshape(M, D))
    if M_pad != M:
        emb_t = jnp.pad(emb_t, ((0, 0), (0, M_pad - M)))

    # weight (V_pad, D) zero-padded; bias (V_pad, 1) padded with -1e30 so
    # padded vocab entries never win the argmax
    w = weight
    b = bias.reshape(V, 1)
    if V_pad != V:
        w = jnp.pad(w, ((0, V_pad - V), (0, 0)))
        b = jnp.pad(b, ((0, V_pad - V), (0, 0)), constant_values=-1e30)

    n_i = M_pad // tm
    n_j = V_pad // tv

    out = pl.pallas_call(
        restorer_kernel,
        out_shape=jax.ShapeDtypeStruct((1, M_pad), jnp.int32),
        grid_spec=pltpu.PrefetchScalarGridSpec(
            num_scalar_prefetch=0,
            grid=(n_i, n_j),
            in_specs=[
                pl.BlockSpec((D, tm), lambda i, j: (0, i)),   # emb^T tile
                pl.BlockSpec((tv, D), lambda i, j: (j, 0)),   # weight tile
                pl.BlockSpec((tv, 1), lambda i, j: (j, 0)),   # bias tile
            ],
            out_specs=pl.BlockSpec((1, tm), lambda i, j: (0, i)),
            scratch_shapes=[
                pltpu.VMEM((1, tm), jnp.float32),   # running max
                pltpu.VMEM((1, tm), jnp.int32),     # running argmax
            ],
        ),
        compiler_params=pltpu.CompilerParams(
            dimension_semantics=("parallel", "arbitrary"),
            # explicit budget: >= v5e's 16 MiB scoped default, safely inside
            # v7x's 64 MiB physical VMEM; tiles above use only a few MiB.
            vmem_limit_bytes=32 * 1024 * 1024,
        ),
    )(emb_t, w, b)

    return out.reshape(M_pad)[:M].reshape(B, S)


def reference_logits(emb, weight, bias):
    return (
        jnp.einsum("bsd,vd->bsv", emb, weight,
                   precision=jax.lax.Precision.HIGHEST)
        + bias
    )


def check_case(key, B, S, D, V, tm, tv):
    k_emb, k_w, k_b = jax.random.split(key, 3)
    emb = jax.random.normal(k_emb, (B, S, D), dtype=jnp.float32)
    bound = 1.0 / (D ** 0.5)
    weight = jax.random.uniform(k_w, (V, D), minval=-bound, maxval=bound,
                                dtype=jnp.float32)
    bias = jax.random.uniform(k_b, (V,), minval=-bound, maxval=bound,
                              dtype=jnp.float32)

    out = restorer_forward(emb, weight, bias, tm=tm, tv=tv)
    out = jax.block_until_ready(out)
    assert out.shape == (B, S) and out.dtype == jnp.int32

    # Reference: Linear -> log_softmax -> argmax. log_softmax is monotone, so
    # argmax of raw logits is the same; compare exactly, tolerating only
    # floating-point near-ties between the two matmul paths.
    logits = reference_logits(emb, weight, bias)
    ref_idx = jnp.argmax(jax.nn.log_softmax(logits, axis=-1), axis=-1)
    picked = jnp.take_along_axis(logits, out[..., None], axis=-1)[..., 0]
    best = jnp.max(logits, axis=-1)
    ok = (out == ref_idx) | (best - picked <= 1e-3)
    assert bool(jnp.all(out >= 0)) and bool(jnp.all(out < V))
    assert bool(jnp.all(ok))


if __name__ == "__main__":
    key = jax.random.PRNGKey(0)
    k1, k2 = jax.random.split(key)

    # Small canonical shape: batch=2, seq=8, d_model=32, vocab=128.
    check_case(k1, B=2, S=8, D=32, V=128, tm=256, tv=512)

    # Exercise padding, multiple row tiles, and the running-argmax carry
    # across several vocab tiles (V=300 -> 3 chunks of 128).
    check_case(k2, B=3, S=50, D=48, V=300, tm=128, tv=128)

    print("KERNEL_OK")
</pallas_src>

<mosaic_0001>
module attributes {stable_mosaic.version = 11 : i64} {
  func.func @restorer_kernel(%arg0: i32, %arg1: i32, %arg2: memref<32x128xf32, #tpu.memory_space<vmem>>, %arg3: memref<128x32xf32, #tpu.memory_space<vmem>>, %arg4: memref<128x1xf32, #tpu.memory_space<vmem>>, %arg5: memref<1x128xi32, #tpu.memory_space<vmem>>, %arg6: memref<1x128xf32, #tpu.memory_space<vmem>>, %arg7: memref<1x128xi32, #tpu.memory_space<vmem>>) attributes {dimension_semantics = [#tpu.dimension_semantics<parallel>, #tpu.dimension_semantics<arbitrary>], iteration_bounds = array<i64: 1, 1>, scalar_prefetch = 0 : i64, scratch_operands = 2 : i64, tpu.core_type = #tpu.core_type<tc>, window_params = [{transform_indices = @transform_0, window_bounds = array<i64: 32, 128>}, {transform_indices = @transform_1, window_bounds = array<i64: 128, 32>}, {transform_indices = @transform_2, window_bounds = array<i64: 128, 1>}, {transform_indices = @transform_3, window_bounds = array<i64: 1, 128>}]} {
    %c0_i32 = arith.constant 0 : i32
    %0 = arith.cmpi eq, %arg1, %c0_i32 : i32
    %1 = arith.extui %0 : i1 to i32
    %c0_i32_0 = arith.constant 0 : i32
    %2 = arith.cmpi ne, %1, %c0_i32_0 : i32
    scf.if %2 {
      %cst_20 = arith.constant 0xFF800000 : f32
      %32 = vector.broadcast %cst_20 : f32 to vector<1x128xf32>
      %c0_21 = arith.constant 0 : index
      %c0_22 = arith.constant 0 : index
      %33 = vector.load %arg6[%c0_21, %c0_22] : memref<1x128xf32, #tpu.memory_space<vmem>>, vector<1x128xf32>
      tpu.vector_store %arg6[%c0_21, %c0_22], %32 {strides = array<i32>} : memref<1x128xf32, #tpu.memory_space<vmem>>, vector<1x128xf32>,
      %c0_i32_23 = arith.constant 0 : i32
      %34 = vector.broadcast %c0_i32_23 : i32 to vector<1x128xi32>
      %c0_24 = arith.constant 0 : index
      %c0_25 = arith.constant 0 : index
      %35 = vector.load %arg7[%c0_24, %c0_25] : memref<1x128xi32, #tpu.memory_space<vmem>>, vector<1x128xi32>
      tpu.vector_store %arg7[%c0_24, %c0_25], %34 {strides = array<i32>} : memref<1x128xi32, #tpu.memory_space<vmem>>, vector<1x128xi32>,
    } else {
    }
    %c0 = arith.constant 0 : index
    %c0_1 = arith.constant 0 : index
    %3 = vector.load %arg3[%c0, %c0_1] : memref<128x32xf32, #tpu.memory_space<vmem>>, vector<128x32xf32>
    %c0_2 = arith.constant 0 : index
    %c0_3 = arith.constant 0 : index
    %4 = vector.load %arg2[%c0_2, %c0_3] : memref<32x128xf32, #tpu.memory_space<vmem>>, vector<32x128xf32>
    %cst = arith.constant dense<0.000000e+00> : vector<128x128xf32>
    %5 = tpu.matmul %3, %4, %cst {dimension_numbers = #tpu.dot_dimension_numbers<[1], [0], [0], [1], [0, 0, 1, 1], [], []>} : vector<128x32xf32>, vector<32x128xf32>, vector<128x128xf32> -> vector<128x128xf32>
    %c0_4 = arith.constant 0 : index
    %c0_5 = arith.constant 0 : index
    %6 = vector.load %arg4[%c0_4, %c0_5] : memref<128x1xf32, #tpu.memory_space<vmem>>, vector<128x1xf32>
    %7 = vector.broadcast %6 : vector<128x1xf32> to vector<128x128xf32>
    %8 = arith.addf %5, %7 : vector<128x128xf32>
    %cst_6 = arith.constant dense<0xFF800000> : vector<128xf32>
    %9 = vector.multi_reduction <maximumf>, %8, %cst_6 [0] : vector<128x128xf32> to vector<128xf32>
    %10 = vector.shape_cast %9 : vector<128xf32> to vector<1x128xf32>
    %11 = tpu.iota {dimensions = array<i32: 0>} : vector<128x128xi32>
    %c128_i32 = arith.constant 128 : i32
    %12 = arith.muli %arg1, %c128_i32 : i32
    %13 = vector.broadcast %12 : i32 to vector<128x128xi32>
    %14 = arith.addi %11, %13 : vector<128x128xi32>
    %15 = vector.broadcast %10 : vector<1x128xf32> to vector<128x128xf32>
    %16 = arith.cmpf oeq, %8, %15 : vector<128x128xf32>
    %c1073741824_i32 = arith.constant 1073741824 : i32
    %17 = vector.broadcast %c1073741824_i32 : i32 to vector<128x128xi32>
    %18 = arith.select %16, %14, %17 : vector<128x128xi1>, vector<128x128xi32>
    %cst_7 = arith.constant dense<2147483647> : vector<128xi32>
    %19 = vector.multi_reduction <minsi>, %18, %cst_7 [0] : vector<128x128xi32> to vector<128xi32>
    %20 = vector.shape_cast %19 : vector<128xi32> to vector<1x128xi32>
    %c0_8 = arith.constant 0 : index
    %c0_9 = arith.constant 0 : index
    %21 = vector.load %arg6[%c0_8, %c0_9] : memref<1x128xf32, #tpu.memory_space<vmem>>, vector<1x128xf32>
    %22 = arith.cmpf ogt, %10, %21 : vector<1x128xf32>
    %c0_10 = arith.constant 0 : index
    %c0_11 = arith.constant 0 : index
    %23 = vector.load %arg6[%c0_10, %c0_11] : memref<1x128xf32, #tpu.memory_space<vmem>>, vector<1x128xf32>
    %24 = arith.select %22, %10, %23 : vector<1x128xi1>, vector<1x128xf32>
    %c0_12 = arith.constant 0 : index
    %c0_13 = arith.constant 0 : index
    %25 = vector.load %arg6[%c0_12, %c0_13] : memref<1x128xf32, #tpu.memory_space<vmem>>, vector<1x128xf32>
    tpu.vector_store %arg6[%c0_12, %c0_13], %24 {strides = array<i32>} : memref<1x128xf32, #tpu.memory_space<vmem>>, vector<1x128xf32>,
    %c0_14 = arith.constant 0 : index
    %c0_15 = arith.constant 0 : index
    %26 = vector.load %arg7[%c0_14, %c0_15] : memref<1x128xi32, #tpu.memory_space<vmem>>, vector<1x128xi32>
    %27 = arith.select %22, %20, %26 : vector<1x128xi1>, vector<1x128xi32>
    %c0_16 = arith.constant 0 : index
    %c0_17 = arith.constant 0 : index
    %28 = vector.load %arg7[%c0_16, %c0_17] : memref<1x128xi32, #tpu.memory_space<vmem>>, vector<1x128xi32>
    tpu.vector_store %arg7[%c0_16, %c0_17], %27 {strides = array<i32>} : memref<1x128xi32, #tpu.memory_space<vmem>>, vector<1x128xi32>,
    %c0_i32_18 = arith.constant 0 : i32
    %29 = arith.cmpi eq, %arg1, %c0_i32_18 : i32
    %30 = arith.extui %29 : i1 to i32
    %c0_i32_19 = arith.constant 0 : i32
    %31 = arith.cmpi ne, %30, %c0_i32_19 : i32
    scf.if %31 {
      %c0_20 = arith.constant 0 : index
      %c0_21 = arith.constant 0 : index
      %32 = vector.load %arg7[%c0_20, %c0_21] : memref<1x128xi32, #tpu.memory_space<vmem>>, vector<1x128xi32>
      %c0_22 = arith.constant 0 : index
      %c0_23 = arith.constant 0 : index
      %33 = vector.load %arg5[%c0_22, %c0_23] : memref<1x128xi32, #tpu.memory_space<vmem>>, vector<1x128xi32>
      tpu.vector_store %arg5[%c0_22, %c0_23], %32 {strides = array<i32>} : memref<1x128xi32, #tpu.memory_space<vmem>>, vector<1x128xi32>,
    } else {
    }
    return
  }
  func.func @transform_0(%arg0: i32, %arg1: i32) -> (i32, i32) {
    %c0_i32 = arith.constant 0 : i32
    %c0_i32_0 = arith.constant 0 : i32
    return %c0_i32, %arg0 : i32, i32
  }
  func.func @transform_1(%arg0: i32, %arg1: i32) -> (i32, i32) {
    %c0_i32 = arith.constant 0 : i32
    %c0_i32_0 = arith.constant 0 : i32
    return %arg1, %c0_i32 : i32, i32
  }
  func.func @transform_2(%arg0: i32, %arg1: i32) -> (i32, i32) {
    %c0_i32 = arith.constant 0 : i32
    %c0_i32_0 = arith.constant 0 : i32
    return %arg1, %c0_i32 : i32, i32
  }
  func.func @transform_3(%arg0: i32, %arg1: i32) -> (i32, i32) {
    %c0_i32 = arith.constant 0 : i32
    %c0_i32_0 = arith.constant 0 : i32
    return %c0_i32, %arg0 : i32, i32
  }
}

</mosaic_0001>

<bundles_post_ra>
// kernel: tpu_custom_call.1
= control target key start
LH: loop header
LB: loop body
LE: loop exit
PB: predicated region body
PF: predicated region fallthrough
CT: control target
= control target key end

     0   :  { %v587_v2 = vmov 0   ;;  %vm137_vm0 = vcmask 261120   ;;  %s868_s0 = inlined_call_operand.vmem [shape: f32[32,128], index: 0, kind: input, shape index: {}]   ;;  %s869_s1 = inlined_call_operand.vmem [shape: f32[128,32], index: 1, kind: input, shape index: {}]   ;;  %s870_s2 = inlined_call_operand.vmem [shape: f32[128,1], index: 2, kind: input, shape index: {}]   ;;  %s871_s3 = inlined_call_operand.hbm [shape: s32[1,128], index: 3, kind: output, shape index: {}]  }
   0x1   :  { %v40_v0 = vld [vmem:[%s868_s0 + $0x18] sm:$0xff]  ;;  %v39_v1 = vld [vmem:[%s868_s0 + $0x10] sm:$0xff]  ;;  %20 = vst [vmem:[#allocation3] sm:$0x1] %v587_v2  ;;  %v38_v3 = vld [vmem:[%s868_s0 + $0x8] sm:$0xff]  ;;  %564 = vset.pattern.permute.xlu1 %v587_v2  ;;  %563 = vset.pattern.permute.xlu0 %v587_v2 }
   0x2   :  { %520 = vmatprep.subr.mxu0 %v40_v0  ;;  %552 = vmatprep.subr.mxu1 %v40_v0  ;;  %v37_v4 = vld [vmem:[%s868_s0] sm:$0xff]  ;;  %v22_v7 = vld [vmem:[%s869_s1 + $0x8] sm:$0xff]  ;;  %v23_v9 = vld [vmem:[%s869_s1 + $0x10] sm:$0xff] }
   0x3   :  { %521 = vmatpush3.msra.mxu0 %v40_v0  ;;  %556 = vmatpush3.msra.mxu1 %v40_v0  ;;  %v21_v5 = vld [vmem:[%s869_s1] sm:$0xff]  ;;  %v30_v8 = vld [vmem:[%s869_s1 + $0x48] sm:$0xff]  ;;  %v31_v10 = vld [vmem:[%s869_s1 + $0x50] sm:$0xff] }
   0x4   :  { %522 = vmatprep.subr.mxu0 %v39_v1  ;;  %553 = vmatprep.subr.mxu1 %v39_v1  ;;  %v29_v6 = vld [vmem:[%s869_s1 + $0x40] sm:$0xff]  ;;  %v43_v11 = vld [vmem:[%s870_s2 + $0x10] sm:$0xff]  ;;  %v24_v13 = vld [vmem:[%s869_s1 + $0x18] sm:$0xff] }
   0x5   :  { %523 = vmatpush3.msra.mxu0 %v39_v1  ;;  %557 = vmatpush3.msra.mxu1 %v39_v1  ;;  %v41_v12 = vld [vmem:[%s870_s2] sm:$0xff]  ;;  %v32_v14 = vld [vmem:[%s869_s1 + $0x58] sm:$0xff] }
   0x6   :  { %524 = vmatprep.subr.mxu0 %v38_v3  ;;  %554 = vmatprep.subr.mxu1 %v38_v3  ;;  %v25_v15 = vld [vmem:[%s869_s1 + $0x20] sm:$0xff] }
   0x7   :  { %525 = vmatpush3.msra.mxu0 %v38_v3  ;;  %558 = vmatpush3.msra.mxu1 %v38_v3  ;;  %v33_v16 = vld [vmem:[%s869_s1 + $0x60] sm:$0xff] }
   0x8   :  { %526 = vmatprep.subr.mxu0 %v37_v4  ;;  %555 = vmatprep.subr.mxu1 %v37_v4 }
   0x9   :  { %527 = vmatpush3.msra.mxu0 %v37_v4  ;;  %559 = vmatpush3.msra.mxu1 %v37_v4 }
   0xa   :  { %528 = vmatprep.mubr.msk.f32.mxu0 %vm137_vm0, %v21_v5  ;;  %540 = vmatprep.mubr.msk.f32.mxu1 %vm137_vm0, %v29_v6 }
   0xb   :  { %529 = vmatmul.mubr.msk.f32.vlgmr.msra.gmra.mxu0 %vm137_vm0, %v22_v7  ;;  %541 = vmatmul.mubr.msk.f32.vlgmr.msra.gmra.mxu1 %vm137_vm0, %v30_v8 }
   0xc   :  { %531 = vmatprep.mubr.msk.f32.mxu0 %vm137_vm0, %v23_v9  ;;  %543 = vmatprep.mubr.msk.f32.mxu1 %vm137_vm0, %v31_v10 }
   0xd   :  { %8 = vsyncpa [#allocation5], 0  ;;  %69 = vperm.xlu1 %564, %v43_v11   ;;  %59 = vperm.xlu0 %563, %v41_v12   ;;  %v44_v17 = vld [vmem:[%s870_s2 + $0x18] sm:$0xff]  ;;  %v42_v18 = vld [vmem:[%s870_s2 + $0x8] sm:$0xff]  ;;  %v588_v37 = vmov -inf  }
   0xe   :  { %v26_v19 = vld [vmem:[%s869_s1 + $0x28] sm:$0xff]  ;;  %v27_v21 = vld [vmem:[%s869_s1 + $0x30] sm:$0xff]  ;;  %v45_v24 = vld [vmem:[%s870_s2 + $0x20] sm:$0xff]  ;;  %19 = vst [vmem:[#allocation2] sm:$0x1] %v588_v37  ;;  %v352_v37 = vlaneseq }
   0xf   :  { %532 = vmatmul.mubr.msk.f32.gmra.mxu0 %vm137_vm0, %v24_v13  ;;  %544 = vmatmul.mubr.msk.f32.gmra.mxu1 %vm137_vm0, %v32_v14  ;;  %v34_v20 = vld [vmem:[%s869_s1 + $0x68] sm:$0xff]  ;;  %v35_v22 = vld [vmem:[%s869_s1 + $0x70] sm:$0xff]  ;;  %v28_v25 = vld [vmem:[%s869_s1 + $0x38] sm:$0xff] }
  0x10   :  { %534 = vmatprep.mubr.msk.f32.mxu0 %vm137_vm0, %v25_v15  ;;  %546 = vmatprep.mubr.msk.f32.mxu1 %vm137_vm0, %v33_v16  ;;  %v46_v23 = vld [vmem:[%s870_s2 + $0x28] sm:$0xff]  ;;  %v36_v26 = vld [vmem:[%s869_s1 + $0x78] sm:$0xff]  ;;  %v47_v28 = vld [vmem:[%s870_s2 + $0x30] sm:$0xff] }
  0x11   :  { %74 = vperm.xlu1 %564, %v44_v17   ;;  %64 = vperm.xlu0 %563, %v42_v18   ;;  %v48_v27 = vld [vmem:[%s870_s2 + $0x38] sm:$0xff]  ;;  %v50_v29 = vld [vmem:[%s870_s2 + $0x48] sm:$0xff]  ;;  %v49_v30 = vld [vmem:[%s870_s2 + $0x40] sm:$0xff] }
  0x12   :  { %v52_v31 = vld [vmem:[%s870_s2 + $0x58] sm:$0xff]  ;;  %v51_v32 = vld [vmem:[%s870_s2 + $0x50] sm:$0xff]  ;;  %v54_v33 = vld [vmem:[%s870_s2 + $0x68] sm:$0xff] }
  0x13   :  { %535 = vmatmul.mubr.msk.f32.gmra.mxu0 %vm137_vm0, %v26_v19  ;;  %547 = vmatmul.mubr.msk.f32.gmra.mxu1 %vm137_vm0, %v34_v20  ;;  %v53_v34 = vld [vmem:[%s870_s2 + $0x60] sm:$0xff]  ;;  %v56_v35 = vld [vmem:[%s870_s2 + $0x78] sm:$0xff]  ;;  %v55_v36 = vld [vmem:[%s870_s2 + $0x70] sm:$0xff]  ;;  %s589_s2 = smov [#allocation4]  }
  0x14   :  { %537 = vmatprep.mubr.msk.f32.mxu0 %vm137_vm0, %v27_v21  ;;  %549 = vmatprep.mubr.msk.f32.mxu1 %vm137_vm0, %v35_v22  ;;  %s476_s26 = sshll.u32 %s589_s2, 4  ;;  %s477_s26 = int_to_ptr.vmem [resolvable:$true] %s476_s26 }
  0x15   :  { %84 = vperm.xlu1 %564, %v46_v23   ;;  %79 = vperm.xlu0 %563, %v45_v24   ;;  %s565_s27 = scalar_lea.vmem %s477_s26, 16  ;;  %s569_s28 = scalar_lea.vmem %s477_s26, 32 }
  0x16   :  { %p566_p0 = scmp.ne.s32.totalorder %s477_s26, %s565_s27  ;;  %p570_p1 = scmp.lt.s32.totalorder %s477_s26, %s477_s26 }
  0x17   :  { %538 = vmatmul.mubr.msk.f32.gmra.mxu0 %vm137_vm0, %v28_v25  ;;  %550 = vmatmul.mubr.msk.f32.gmra.mxu1 %vm137_vm0, %v36_v26  ;;  %p571_p2 = scmp.lt.s32.totalorder %s569_s28, %s565_s27 }
  0x19   :  { %94 = vperm.xlu1 %564, %v48_v27   ;;  %89 = vperm.xlu0 %563, %v47_v28   ;;  %p572_p3 = por %p571_p2, %p570_p1 }
  0x1b   :  { %p573_p4 = pnand %p572_p3, %p566_p0 }
  0x1d   :  { %104 = vperm.xlu1 %564, %v50_v29   ;;  %99 = vperm.xlu0 %563, %v49_v30  }
  0x21   :  { %114 = vperm.xlu1 %564, %v52_v31   ;;  %109 = vperm.xlu0 %563, %v51_v32  }
  0x25   :  { %124 = vperm.xlu1 %564, %v54_v33   ;;  %119 = vperm.xlu0 %563, %v53_v34  }
  0x29   :  { %134 = vperm.xlu1 %564, %v56_v35   ;;  %129 = vperm.xlu0 %563, %v55_v36  }
  0x88   :  { %v70_v38 = vpop.permute.xlu1 %69  ;;  %v60_v39 = vpop.permute.xlu0 %59 }
  0x8c   :  { %v75_v40 = vpop.permute.xlu1 %74  ;;  %v65_v41 = vpop.permute.xlu0 %64 }
  0x90   :  { %v85_v42 = vpop.permute.xlu1 %84  ;;  %v80_v43 = vpop.permute.xlu0 %79 }
  0x94   :  { %v95_v44 = vpop.permute.xlu1 %94  ;;  %v90_v45 = vpop.permute.xlu0 %89 }
  0x98   :  { %v105_v46 = vpop.permute.xlu1 %104  ;;  %v100_v47 = vpop.permute.xlu0 %99 }
  0x9c   :  { %v115_v54 = vpop.permute.xlu1 %114  ;;  %v110_v55 = vpop.permute.xlu0 %109 }
  0xa0   :  { %v125_v63 = vpop.permute.xlu1 %124  ;;  %v120_v0 = vpop.permute.xlu0 %119 }
  0xa4   :  { %v135_v24 = vpop.permute.xlu1 %134  ;;  %v130_v25 = vpop.permute.xlu0 %129 }
  0xcb   :  { %v530_v48 = vpop.f32.mrf.mxu0  ;;  %v542_v49 = vpop.f32.mrf.mxu1 }
  0xcc   :  { %v736_v1 = vadd.f32 %v530_v48, %v65_v41  ;;  %v752_v11 = vadd.f32 %v542_v49, %v105_v46 }
  0xcd   :  { %v252_v50 = vpop.f32.mrf.mxu0  ;;  %v292_v51 = vpop.f32.mrf.mxu1 }
  0xce   :  { %v738_v2 = vadd.f32 %v252_v50, %v60_v39  ;;  %v742_v4 = vadd.f32 %v292_v51, %v100_v47 }
  0xcf   :  { %v533_v52 = vpop.f32.mrf.mxu0  ;;  %v545_v53 = vpop.f32.mrf.mxu1 }
  0xd0   :  { %v744_v7 = vadd.f32 %v533_v52, %v75_v40  ;;  %v754_v12 = vadd.f32 %v545_v53, %v115_v54  ;;  %v353_v40 = vshrl.u32 %v352_v37, 7 }
  0xd1   :  { %v262_v56 = vpop.f32.mrf.mxu0  ;;  %v302_v57 = vpop.f32.mrf.mxu1 }
  0xd2   :  { %v756_v14 = vadd.f32 %v262_v56, %v70_v38  ;;  %v763_v18 = vadd.f32 %v302_v57, %v110_v55  ;;  %v356_v46 = vadd.s32 24, %v353_v40  ;;  %v357_v47 = vadd.s32 32, %v353_v40 }
  0xd3   :  { %v536_v58 = vpop.f32.mrf.mxu0  ;;  %v548_v59 = vpop.f32.mrf.mxu1  ;;  %v358_v48 = vadd.s32 40, %v353_v40  ;;  %v359_v49 = vadd.s32 48, %v353_v40  ;;  %v360_v50 = vadd.s32 56, %v353_v40  ;;  %v361_v51 = vadd.s32 64, %v353_v40 }
  0xd4   :  { %v734_v60 = vadd.f32 %v536_v58, %v85_v42  ;;  %v771_v26 = vadd.f32 %v548_v59, %v125_v63  ;;  %v362_v53 = vadd.s32 72, %v353_v40  ;;  %v363_v54 = vadd.s32 80, %v353_v40 }
  0xd5   :  { %v272_v61 = vpop.f32.mrf.mxu0  ;;  %v312_v62 = vpop.f32.mrf.mxu1  ;;  %v364_v55 = vadd.s32 88, %v353_v40  ;;  %v365_v56 = vadd.s32 96, %v353_v40  ;;  %v366_v57 = vadd.s32 104, %v353_v40  ;;  %v367_v58 = vadd.s32 112, %v353_v40 }
  0xd6   :  { %v740_v3 = vadd.f32 %v272_v61, %v80_v43  ;;  %v332_v8 = vmax.f32 %v736_v1, %v734_v60  ;;  %v766_v21 = vadd.f32 %v312_v62, %v120_v0  ;;  %v354_v43 = vadd.s32 8, %v353_v40 }
  0xd7   :  { %v539_v5 = vpop.f32.mrf.mxu0  ;;  %v551_v6 = vpop.f32.mrf.mxu1  ;;  %v368_v59 = vadd.s32 120, %v353_v40 }
  0xd8   :  { %v331_v9 = vmax.f32 %v738_v2, %v740_v3  ;;  %v750_v10 = vadd.f32 %v539_v5, %v95_v44  ;;  %v336_v20 = vmax.f32 %v332_v8, %v752_v11  ;;  %v774_v28 = vadd.f32 %v551_v6, %v135_v24 }
  0xd9   :  { %v282_v13 = vpop.f32.mrf.mxu0  ;;  %v322_v19 = vpop.f32.mrf.mxu1 }
  0xda   :  { %v335_v15 = vmax.f32 %v331_v9, %v742_v4  ;;  %v334_v16 = vmax.f32 %v744_v7, %v750_v10  ;;  %v761_v17 = vadd.f32 %v282_v13, %v90_v45  ;;  %v323_v29 = vadd.f32 %v322_v19, %v130_v25 }
  0xdb   :  { %v340_v31 = vmax.f32 %v336_v20, %v771_v26  ;;  %v355_v45 = vadd.s32 16, %v353_v40  ;;  %v458_v20 = vld [vmem:[#allocation2] sm:$0x1] }
  0xdc   :  { %v338_v22 = vmax.f32 %v334_v16, %v754_v12  ;;  %v333_v23 = vmax.f32 %v756_v14, %v761_v17  ;;  %v339_v27 = vmax.f32 %v335_v15, %v766_v21 }
  0xde   :  { %v337_v30 = vmax.f32 %v333_v23, %v763_v18  ;;  %v342_v32 = vmax.f32 %v338_v22, %v774_v28  ;;  %v343_v34 = vmax.f32 %v339_v27, %v340_v31 }
  0xe0   :  { %v341_v33 = vmax.f32 %v337_v30, %v323_v29 }
  0xe2   :  { %v344_v35 = vmax.f32 %v341_v33, %v342_v32 }
  0xe4   :  { %v345_v36 = vmax.f32 %v343_v34, %v344_v35  ;;  %v462_v34 = vld [vmem:[#allocation3] sm:$0x1] }
  0xe6   :  { %v346_v38 = vrot.slane %v345_v36, 4 }
  0xe8   :  { %v347_v39 = vmax.f32 %v345_v36, %v346_v38 }
  0xea   :  { %v348_v41 = vrot.slane %v347_v39, 2 }
  0xec   :  { %v349_v42 = vmax.f32 %v347_v39, %v348_v41 }
  0xee   :  { %v350_v44 = vrot.slane %v349_v42, 1 }
  0xf0   :  { %v779_v52 = vmax.f32 %v349_v42, %v350_v44 }
  0xf2   :  { %vm387_vm1 = vcmp.eq.f32.partialorder %v738_v2, %v779_v52  ;;  %vm388_vm2 = vcmp.eq.f32.partialorder %v736_v1, %v779_v52  ;;  %vm389_vm3 = vcmp.eq.f32.partialorder %v756_v14, %v779_v52  ;;  %vm390_vm4 = vcmp.eq.f32.partialorder %v744_v7, %v779_v52 }
  0xf3   :  { %vm391_vm5 = vcmp.eq.f32.partialorder %v740_v3, %v779_v52  ;;  %vm392_vm6 = vcmp.eq.f32.partialorder %v734_v60, %v779_v52  ;;  %vm393_vm7 = vcmp.eq.f32.partialorder %v761_v17, %v779_v52  ;;  %vm394_vm8 = vcmp.eq.f32.partialorder %v750_v10, %v779_v52 }
  0xf4   :  { %vm395_vm9 = vcmp.eq.f32.partialorder %v742_v4, %v779_v52  ;;  %vm396_vm10 = vcmp.eq.f32.partialorder %v752_v11, %v779_v52  ;;  %vm397_vm11 = vcmp.eq.f32.partialorder %v763_v18, %v779_v52  ;;  %vm398_vm12 = vcmp.eq.f32.partialorder %v754_v12, %v779_v52 }
  0xf5   :  { %vm399_vm13 = vcmp.eq.f32.partialorder %v766_v21, %v779_v52  ;;  %vm400_vm14 = vcmp.eq.f32.partialorder %v771_v26, %v779_v52  ;;  %vm401_vm15 = vcmp.eq.f32.partialorder %v323_v29, %v779_v52  ;;  %vm402_vm0 = vcmp.eq.f32.partialorder %v774_v28, %v779_v52 }
  0xf6   :  { %v403_v61 = vsel %vm387_vm1, %v353_v40, 1073741824  ;;  %v404_v62 = vsel %vm388_vm2, %v354_v43, 1073741824  ;;  %v405_v63 = vsel %vm389_vm3, %v355_v45, 1073741824  ;;  %v406_v0 = vsel %vm390_vm4, %v356_v46, 1073741824 }
  0xf7   :  { %v407_v5 = vsel %vm391_vm5, %v357_v47, 1073741824  ;;  %v408_v2 = vsel %vm392_vm6, %v358_v48, 1073741824  ;;  %v409_v1 = vsel %vm393_vm7, %v359_v49, 1073741824  ;;  %v410_v6 = vsel %vm394_vm8, %v360_v50, 1073741824 }
  0xf8   :  { %v411_v7 = vsel %vm395_vm9, %v361_v51, 1073741824  ;;  %v412_v3 = vsel %vm396_vm10, %v362_v53, 1073741824  ;;  %v413_v60 = vsel %vm397_vm11, %v363_v54, 1073741824  ;;  %v414_v8 = vsel %vm398_vm12, %v364_v55, 1073741824 }
  0xf9   :  { %v415_v9 = vsel %vm399_vm13, %v365_v56, 1073741824  ;;  %v416_v4 = vsel %vm400_vm14, %v366_v57, 1073741824  ;;  %v417_v10 = vsel %vm401_vm15, %v367_v58, 1073741824  ;;  %v418_v11 = vsel %vm402_vm0, %v368_v59, 1073741824 }
  0xfa   :  { %vm419_vm1 = vcmp.lt.s32.totalorder %v403_v61, %v407_v5  ;;  %vm421_vm2 = vcmp.lt.s32.totalorder %v404_v62, %v408_v2  ;;  %vm423_vm3 = vcmp.lt.s32.totalorder %v405_v63, %v409_v1  ;;  %vm425_vm4 = vcmp.lt.s32.totalorder %v406_v0, %v410_v6 }
  0xfb   :  { %v420_v12 = vsel %vm419_vm1, %v403_v61, %v407_v5  ;;  %v422_v13 = vsel %vm421_vm2, %v404_v62, %v408_v2  ;;  %v424_v14 = vsel %vm423_vm3, %v405_v63, %v409_v1  ;;  %v426_v15 = vsel %vm425_vm4, %v406_v0, %v410_v6 }
  0xfc   :  { %vm427_vm5 = vcmp.lt.s32.totalorder %v420_v12, %v411_v7  ;;  %vm429_vm6 = vcmp.lt.s32.totalorder %v422_v13, %v412_v3  ;;  %vm431_vm7 = vcmp.lt.s32.totalorder %v424_v14, %v413_v60  ;;  %vm433_vm8 = vcmp.lt.s32.totalorder %v426_v15, %v414_v8 }
  0xfd   :  { %v428_v16 = vsel %vm427_vm5, %v420_v12, %v411_v7  ;;  %v430_v17 = vsel %vm429_vm6, %v422_v13, %v412_v3  ;;  %v432_v18 = vsel %vm431_vm7, %v424_v14, %v413_v60  ;;  %v434_v19 = vsel %vm433_vm8, %v426_v15, %v414_v8 }
  0xfe   :  { %vm435_vm9 = vcmp.lt.s32.totalorder %v428_v16, %v415_v9  ;;  %vm437_vm10 = vcmp.lt.s32.totalorder %v430_v17, %v416_v4  ;;  %vm439_vm11 = vcmp.lt.s32.totalorder %v432_v18, %v417_v10  ;;  %vm441_vm12 = vcmp.lt.s32.totalorder %v434_v19, %v418_v11 }
  0xff   :  { %v436_v21 = vsel %vm435_vm9, %v428_v16, %v415_v9  ;;  %v438_v22 = vsel %vm437_vm10, %v430_v17, %v416_v4  ;;  %v440_v23 = vsel %vm439_vm11, %v432_v18, %v417_v10  ;;  %v442_v24 = vsel %vm441_vm12, %v434_v19, %v418_v11 }
 0x100   :  { %vm443_vm13 = vcmp.lt.s32.totalorder %v436_v21, %v438_v22  ;;  %vm445_vm14 = vcmp.lt.s32.totalorder %v440_v23, %v442_v24  ;;  %vm459_vm15 = vcmp.gt.f32.partialorder %v779_v52, %v458_v20 }
 0x101   :  { %v444_v25 = vsel %vm443_vm13, %v436_v21, %v438_v22  ;;  %v446_v26 = vsel %vm445_vm14, %v440_v23, %v442_v24  ;;  %v460_v27 = vsel %vm459_vm15, %v779_v52, %v458_v20 }
 0x102   :  { %vm447_vm0 = vcmp.lt.s32.totalorder %v444_v25, %v446_v26  ;;  %461 = vst [vmem:[#allocation2] sm:$0x1] %v460_v27 }
 0x103   :  { %v448_v28 = vsel %vm447_vm0, %v444_v25, %v446_v26 }
 0x104   :  { %v449_v29 = vrot.slane %v448_v28, 4 }
 0x106   :  { %vm450_vm1 = vcmp.lt.s32.totalorder %v448_v28, %v449_v29 }
 0x107   :  { %v451_v30 = vsel %vm450_vm1, %v448_v28, %v449_v29 }
 0x108   :  { %v452_v31 = vrot.slane %v451_v30, 2 }
 0x10a   :  { %vm453_vm2 = vcmp.lt.s32.totalorder %v451_v30, %v452_v31 }
 0x10b   :  { %v454_v32 = vsel %vm453_vm2, %v451_v30, %v452_v31 }
 0x10c   :  { %v455_v33 = vrot.slane %v454_v32, 1 }
 0x10e   :  { %vm456_vm3 = vcmp.lt.s32.totalorder %v454_v32, %v455_v33 }
 0x10f   :  { %v457_v35 = vsel %vm456_vm3, %v454_v32, %v455_v33 }
 0x110   :  { %v463_v36 = vsel %vm459_vm15, %v457_v35, %v462_v34 }
 0x111   :  { %464 = vst [vmem:[#allocation3] sm:$0x1] %v463_v36 }
 0x118   :  { %v468_v37 = vld [vmem:[#allocation3] sm:$0x1] }
 0x119   :  { %469 = vst [vmem:[#allocation4] sm:$0x1] %v468_v37 }
 0x11a   :  { %576 = shalt.err (!%p573_p4)
}
 0x11b   :  { %479 = dma.vmem_to_hbm [thread:$0]  %s477_s26, 16, %s871_s3, [#allocation5]  }
 0x11c   :  { %585 = dma.done.wait [#allocation5], 16  }
 0x11d   :  { %586 = vsyncadd [#allocation5], 4294967280 }
 0x11e   :  { %483 = vsyncpa [#allocation5], 1 }

</bundles_post_ra>
